<compile_context>
chip_gen: v5e
topology: v5e:2x2
jax: 0.10.0
libtpu: 0.0.40
codegen_flags: <defaults>
</compile_context>

<pallas_src>
import functools
import math
import warnings

import jax
import jax.numpy as jnp
from jax.experimental import pallas as pl
from jax.experimental.pallas import tpu as pltpu

# Donation is a best-effort perf hint; keep stderr clean if XLA cannot reuse a
# donated state buffer for some shape.
warnings.filterwarnings("ignore", message=r"Some donated buffers were not usable")

# HH constants from the PyTorch module
_G_NA, _G_K, _G_L = 120.0, 120.0, 0.3
_V_NA, _V_K, _V_L = 120.0, -120.0, 10.6

_LANES = 128
_SUBLANES = 8
_MIN_TILE = _LANES * _SUBLANES          # 1024-element alignment unit

# exp(-c/10) factors so alpha_n / alpha_m / beta_h share one exp(-mem/10)
_E_M1_0 = math.exp(-1.0)
_E_M2_5 = math.exp(-2.5)
_E_M3_0 = math.exp(-3.0)


def _cdiv(a, b):
    return -(-a // b)


# --------------------------- kernel-side compute ---------------------------
def _hh_step(x, mem, m, n, h, *, threshold, dt):
    """One elementwise HH update in f32 (shared by both kernels)."""
    f32 = jnp.float32
    inv_cm_dt = f32(dt / 0.02)          # dt / Cm folded into a single constant
    dtf = f32(dt)

    # ionic currents (previous-step membrane potential)
    i_na = (m * m * m) * _G_NA * h * (mem - _V_NA)
    i_k = (n * n * n * n) * _G_K * (mem - _V_K)
    i_l = _G_L * (mem - _V_L)

    # membrane integration:  mem += dt * (I - I_Na - I_K - I_L) / Cm
    mem = mem + inv_cm_dt * (x - i_na - i_k - i_l)

    # gating-variable rate constants.
    # exp(-(mem+c)/10) = exp(-mem/10) * exp(-c/10): one shared EUP exp for
    # alpha_n / alpha_m / beta_h.  (Removable 0/0 singularities at mem == -10
    # and mem == -25 are kept as-is to match the PyTorch reference.)
    e10 = jnp.exp(mem * (-0.1))
    alpha_n = 0.01 * (mem + 10.0) / (1.0 - e10 * _E_M1_0)
    beta_n = 0.125 * jnp.exp(mem * (-1.0 / 80.0))
    alpha_m = 0.1 * (mem + 25.0) / (1.0 - e10 * _E_M2_5)
    beta_m = 4.0 * jnp.exp(mem * (-1.0 / 18.0))
    alpha_h = 0.07 * jnp.exp(mem * (-1.0 / 20.0))
    beta_h = 1.0 / (1.0 + e10 * _E_M3_0)

    n = n + dtf * (alpha_n * (1.0 - n) - beta_n * n)
    m = m + dtf * (alpha_m * (1.0 - m) - beta_m * m)
    h = h + dtf * (alpha_h * (1.0 - h) - beta_h * h)

    # atan surrogate forward == hard threshold; soft reset of mem
    spike = (mem - threshold > 0.0).astype(f32)
    mem = mem * (1.0 - spike)
    return spike, mem, m, n, h


def _simhh_carry_kernel(x_ref, mem_ref, m_ref, n_ref, h_ref,
                        spike_ref, mem_o_ref, m_o_ref, n_o_ref, h_o_ref,
                        *, threshold, dt):
    spike, mem, m, n, h = _hh_step(
        x_ref[...].astype(jnp.float32), mem_ref[...], m_ref[...],
        n_ref[...], h_ref[...], threshold=threshold, dt=dt)
    spike_ref[...] = spike.astype(spike_ref.dtype)
    mem_o_ref[...] = mem
    m_o_ref[...] = m
    n_o_ref[...] = n
    h_o_ref[...] = h


def _simhh_init_kernel(x_ref, spike_ref, mem_o_ref, m_o_ref, n_o_ref, h_o_ref,
                       *, threshold, dt):
    # First step after reset: mem = m = n = h = 0 is folded in-kernel, so the
    # zero state is never broadcast to, nor read back from, HBM.
    x = x_ref[...].astype(jnp.float32)
    z = jnp.zeros_like(x)
    spike, mem, m, n, h = _hh_step(x, z, z, z, z, threshold=threshold, dt=dt)
    spike_ref[...] = spike.astype(spike_ref.dtype)
    mem_o_ref[...] = mem
    m_o_ref[...] = m
    n_o_ref[...] = n
    h_o_ref[...] = h


# ------------------------------ tiling policy ------------------------------
@functools.lru_cache(maxsize=None)
def _chip_config():
    """(per-operand block bytes, vmem limit bytes, min grid steps)."""
    target_bytes = 1024 * 1024           # v5e / v6e: ~1 MiB blocks, single TC
    vmem_limit = 32 * 1024 * 1024
    min_grid = 1                         # serial grid -> no forced split
    try:
        vmem_cap = int(pltpu.get_tpu_info().vmem_capacity_bytes)
    except Exception:
        vmem_cap = 128 * 1024 * 1024
    if vmem_cap <= 96 * 1024 * 1024:     # v7x-class: 64 MiB/TC, 2 TCs, fast HBM
        target_bytes = 1536 * 1024
        vmem_limit = 48 * 1024 * 1024
        min_grid = 2                     # both TensorCores get parallel steps
    return target_bytes, vmem_limit, min_grid


def _pick_tile_rows(rows, target_bytes, min_grid):
    """Lane-dense tile height: large blocks, sublane-aligned, balanced grid."""
    t = max(_SUBLANES,
            (target_bytes // (_LANES * 4)) // _SUBLANES * _SUBLANES)
    t = min(t, rows)
    if min_grid > 1 and rows > _SUBLANES:
        steps = max(min_grid, _cdiv(rows, t))
        steps = _cdiv(steps, min_grid) * min_grid    # even split across cores
        t = _cdiv(_cdiv(rows, steps), _SUBLANES) * _SUBLANES
        t = max(_SUBLANES, min(t, rows))
    return t


# ------------------------------ layout helpers -----------------------------
def _as_lanes(a, pad):
    a = a.reshape(-1)
    if pad:
        # TODO(synk): jnp.pad copies the whole tensor when numel % 1024 != 0;
        # an aligned-prefix + tiny-tail split would avoid that copy.  Typical
        # NN shapes (and the demo) are 1024-aligned, so this path is dead.
        a = jnp.pad(a, (0, pad))
    return a.reshape(-1, _LANES)


def _from_lanes(a, shape, size, pad):
    a = a.reshape(-1)
    if pad:
        a = a[:size]
    return a.reshape(shape)


def _run(kernel, operands, out_dtypes, aliases, threshold, dt):
    rows = operands[0].shape[0]
    target_bytes, vmem_limit, min_grid = _chip_config()
    tile_rows = _pick_tile_rows(rows, target_bytes, min_grid)
    spec = pl.BlockSpec((tile_rows, _LANES), lambda i: (i, 0))
    return pl.pallas_call(
        functools.partial(kernel, threshold=threshold, dt=dt),
        out_shape=tuple(jax.ShapeDtypeStruct((rows, _LANES), d)
                        for d in out_dtypes),
        grid_spec=pltpu.PrefetchScalarGridSpec(
            num_scalar_prefetch=0,
            grid=(pl.cdiv(rows, tile_rows),),
            in_specs=[spec] * len(operands),
            out_specs=[spec] * len(out_dtypes)),
        input_output_aliases=aliases,
        compiler_params=pltpu.CompilerParams(
            dimension_semantics=("parallel",),
            vmem_limit_bytes=vmem_limit),
    )(*operands)


# ------------------------------ step wrappers ------------------------------
@functools.partial(jax.jit, static_argnames=("threshold", "dt"))
def _simhh_step_init(x, *, threshold, dt):
    shape, size = x.shape, x.size
    pad = (-size) % _MIN_TILE
    x2 = _as_lanes(x, pad)
    outs = _run(_simhh_init_kernel, (x2,),
                (x.dtype, jnp.float32, jnp.float32, jnp.float32, jnp.float32),
                {}, threshold, dt)
    return tuple(_from_lanes(o, shape, size, pad) for o in outs)


@functools.partial(jax.jit, static_argnames=("threshold", "dt"),
                   donate_argnums=(1, 2, 3, 4))
def _simhh_step_carry(x, mem, m, n, h, *, threshold, dt):
    shape, size = x.shape, x.size
    pad = (-size) % _MIN_TILE
    x2 = _as_lanes(x, pad)
    # State is carried in f32 regardless of the input dtype.
    st2 = tuple(_as_lanes(s.astype(jnp.float32), pad) for s in (mem, m, n, h))
    outs = _run(_simhh_carry_kernel, (x2,) + st2,
                (x.dtype, jnp.float32, jnp.float32, jnp.float32, jnp.float32),
                {1: 1, 2: 2, 3: 3, 4: 4},     # update mem/m/n/h in place
                threshold, dt)
    return tuple(_from_lanes(o, shape, size, pad) for o in outs)


# --------------------------------- module -----------------------------------
class SimHHNode:
    """JAX/Pallas port of the simplified Hodgkin-Huxley neuron (forward only)."""

    def __init__(self, threshold=50.0, tau=2.0, *args, **kwargs):
        self.threshold = float(threshold)
        self.tau = tau
        self.dt = 0.01
        self.v_reset = 0.0
        self.spike = 0.0
        self.mem = None            # None -> fresh zero state, folded in-kernel
        self.m = self.n = self.h = None
        # TODO(synk): atan surrogate-gradient backward (custom VJP) is a
        # training-time construct; forward semantics (hard threshold) only.

    def __call__(self, inputs):
        if self.mem is None:
            spike, mem, m, n, h = _simhh_step_init(
                inputs, threshold=self.threshold, dt=self.dt)
        else:
            spike, mem, m, n, h = _simhh_step_carry(
                inputs, self.mem, self.m, self.n, self.h,
                threshold=self.threshold, dt=self.dt)
        self.mem, self.m, self.n, self.h = mem, m, n, h
        self.spike = spike
        return spike

    forward = __call__

    def n_reset(self):
        self.mem = None
        self.spike = 0.0
        self.m = self.n = self.h = None


# ------------------------- pure-JAX reference ------------------------------
def _ref_step(x, state, threshold, dt):
    mem, m, n, h = state
    i_na = (m * m * m) * _G_NA * h * (mem - _V_NA)
    i_k = (n * n * n * n) * _G_K * (mem - _V_K)
    i_l = _G_L * (mem - _V_L)
    mem = mem + dt * (x - i_na - i_k - i_l) / 0.02
    alpha_n = 0.01 * (mem + 10.0) / (1.0 - jnp.exp(-(mem + 10.0) / 10.0))
    beta_n = 0.125 * jnp.exp(-mem / 80.0)
    alpha_m = 0.1 * (mem + 25.0) / (1.0 - jnp.exp(-(mem + 25.0) / 10.0))
    beta_m = 4.0 * jnp.exp(-mem / 18.0)
    alpha_h = 0.07 * jnp.exp(-mem / 20.0)
    beta_h = 1.0 / (1.0 + jnp.exp(-(mem + 30.0) / 10.0))
    n = n + dt * (alpha_n * (1.0 - n) - beta_n * n)
    m = m + dt * (alpha_m * (1.0 - m) - beta_m * m)
    h = h + dt * (alpha_h * (1.0 - h) - beta_h * h)
    spike = (mem - threshold > 0.0).astype(x.dtype)
    mem = mem * (1.0 - spike)
    return spike, (mem, m, n, h)


if __name__ == "__main__":
    key = jax.random.PRNGKey(0)
    k1, k2 = jax.random.split(key)

    # (B, C, H, W) membrane-current input; scaled so some neurons cross the
    # 50 mV threshold and actually spike.
    x1 = jax.random.normal(k1, (2, 4, 16, 16), jnp.float32) * 100.0
    x2 = jax.random.normal(k2, (2, 4, 16, 16), jnp.float32) * 100.0

    node = SimHHNode()
    s1 = jax.block_until_ready(node(x1))   # first step: init kernel (zero state)
    s2 = jax.block_until_ready(node(x2))   # second step: carried, aliased state

    # reference (same arithmetic, plain JAX)
    state = (0.0, 0.0, 0.0, 0.0)
    r1, state = _ref_step(x1, state, node.threshold, node.dt)
    r2, state = _ref_step(x2, state, node.threshold, node.dt)

    assert s1.shape == x1.shape and s2.shape == x2.shape
    assert jnp.allclose(s1, r1, atol=1e-5, rtol=1e-5)
    assert jnp.allclose(s2, r2, atol=1e-5, rtol=1e-5)
    assert jnp.allclose(node.mem, state[0], atol=1e-3, rtol=1e-4)
    assert jnp.allclose(node.m, state[1], atol=1e-5, rtol=1e-5)
    assert jnp.allclose(node.n, state[2], atol=1e-5, rtol=1e-5)
    assert jnp.allclose(node.h, state[3], atol=1e-5, rtol=1e-5)

    print("KERNEL_OK")
</pallas_src>

<mosaic_0001>
module attributes {stable_mosaic.version = 11 : i64} {
  func.func @_simhh_init_kernel(%arg0: i32, %arg1: memref<16x128xf32, #tpu.memory_space<vmem>>, %arg2: memref<16x128xf32, #tpu.memory_space<vmem>>, %arg3: memref<16x128xf32, #tpu.memory_space<vmem>>, %arg4: memref<16x128xf32, #tpu.memory_space<vmem>>, %arg5: memref<16x128xf32, #tpu.memory_space<vmem>>, %arg6: memref<16x128xf32, #tpu.memory_space<vmem>>) attributes {dimension_semantics = [#tpu.dimension_semantics<parallel>], iteration_bounds = array<i64: 1>, scalar_prefetch = 0 : i64, scratch_operands = 0 : i64, tpu.core_type = #tpu.core_type<tc>, window_params = [{transform_indices = @transform_0, window_bounds = array<i64: 16, 128>}, {transform_indices = @transform_1, window_bounds = array<i64: 16, 128>}, {transform_indices = @transform_2, window_bounds = array<i64: 16, 128>}, {transform_indices = @transform_3, window_bounds = array<i64: 16, 128>}, {transform_indices = @transform_4, window_bounds = array<i64: 16, 128>}, {transform_indices = @transform_5, window_bounds = array<i64: 16, 128>}]} {
    %c0 = arith.constant 0 : index
    %c0_0 = arith.constant 0 : index
    %0 = vector.load %arg1[%c0, %c0_0] : memref<16x128xf32, #tpu.memory_space<vmem>>, vector<16x128xf32>
    %cst = arith.constant 0.000000e+00 : f32
    %1 = vector.broadcast %cst : f32 to vector<16x128xf32>
    %2 = arith.mulf %1, %1 : vector<16x128xf32>
    %3 = arith.mulf %2, %1 : vector<16x128xf32>
    %cst_1 = arith.constant 1.200000e+02 : f32
    %4 = vector.broadcast %cst_1 : f32 to vector<16x128xf32>
    %5 = arith.mulf %3, %4 : vector<16x128xf32>
    %6 = arith.mulf %5, %1 : vector<16x128xf32>
    %cst_2 = arith.constant 1.200000e+02 : f32
    %7 = vector.broadcast %cst_2 : f32 to vector<16x128xf32>
    %8 = arith.subf %1, %7 : vector<16x128xf32>
    %9 = arith.mulf %6, %8 : vector<16x128xf32>
    %10 = arith.mulf %1, %1 : vector<16x128xf32>
    %11 = arith.mulf %10, %1 : vector<16x128xf32>
    %12 = arith.mulf %11, %1 : vector<16x128xf32>
    %cst_3 = arith.constant 1.200000e+02 : f32
    %13 = vector.broadcast %cst_3 : f32 to vector<16x128xf32>
    %14 = arith.mulf %12, %13 : vector<16x128xf32>
    %cst_4 = arith.constant -1.200000e+02 : f32
    %15 = vector.broadcast %cst_4 : f32 to vector<16x128xf32>
    %16 = arith.subf %1, %15 : vector<16x128xf32>
    %17 = arith.mulf %14, %16 : vector<16x128xf32>
    %cst_5 = arith.constant 1.060000e+01 : f32
    %18 = vector.broadcast %cst_5 : f32 to vector<16x128xf32>
    %19 = arith.subf %1, %18 : vector<16x128xf32>
    %cst_6 = arith.constant 3.000000e-01 : f32
    %20 = vector.broadcast %cst_6 : f32 to vector<16x128xf32>
    %21 = arith.mulf %20, %19 : vector<16x128xf32>
    %22 = arith.subf %0, %9 : vector<16x128xf32>
    %23 = arith.subf %22, %17 : vector<16x128xf32>
    %24 = arith.subf %23, %21 : vector<16x128xf32>
    %cst_7 = arith.constant 5.000000e-01 : f32
    %25 = vector.broadcast %cst_7 : f32 to vector<16x128xf32>
    %26 = arith.mulf %25, %24 : vector<16x128xf32>
    %27 = arith.addf %1, %26 : vector<16x128xf32>
    %cst_8 = arith.constant -1.000000e-01 : f32
    %28 = vector.broadcast %cst_8 : f32 to vector<16x128xf32>
    %29 = arith.mulf %27, %28 : vector<16x128xf32>
    %30 = math.exp %29 : vector<16x128xf32>
    %cst_9 = arith.constant 1.000000e+01 : f32
    %31 = vector.broadcast %cst_9 : f32 to vector<16x128xf32>
    %32 = arith.addf %27, %31 : vector<16x128xf32>
    %cst_10 = arith.constant 0.00999999977 : f32
    %33 = vector.broadcast %cst_10 : f32 to vector<16x128xf32>
    %34 = arith.mulf %33, %32 : vector<16x128xf32>
    %cst_11 = arith.constant 0.36787945 : f32
    %35 = vector.broadcast %cst_11 : f32 to vector<16x128xf32>
    %36 = arith.mulf %30, %35 : vector<16x128xf32>
    %cst_12 = arith.constant 1.000000e+00 : f32
    %37 = vector.broadcast %cst_12 : f32 to vector<16x128xf32>
    %38 = arith.subf %37, %36 : vector<16x128xf32>
    %39 = arith.divf %34, %38 : vector<16x128xf32>
    %cst_13 = arith.constant -1.250000e-02 : f32
    %40 = vector.broadcast %cst_13 : f32 to vector<16x128xf32>
    %41 = arith.mulf %27, %40 : vector<16x128xf32>
    %42 = math.exp %41 : vector<16x128xf32>
    %cst_14 = arith.constant 1.250000e-01 : f32
    %43 = vector.broadcast %cst_14 : f32 to vector<16x128xf32>
    %44 = arith.mulf %43, %42 : vector<16x128xf32>
    %cst_15 = arith.constant 2.500000e+01 : f32
    %45 = vector.broadcast %cst_15 : f32 to vector<16x128xf32>
    %46 = arith.addf %27, %45 : vector<16x128xf32>
    %cst_16 = arith.constant 1.000000e-01 : f32
    %47 = vector.broadcast %cst_16 : f32 to vector<16x128xf32>
    %48 = arith.mulf %47, %46 : vector<16x128xf32>
    %cst_17 = arith.constant 8.208500e-02 : f32
    %49 = vector.broadcast %cst_17 : f32 to vector<16x128xf32>
    %50 = arith.mulf %30, %49 : vector<16x128xf32>
    %cst_18 = arith.constant 1.000000e+00 : f32
    %51 = vector.broadcast %cst_18 : f32 to vector<16x128xf32>
    %52 = arith.subf %51, %50 : vector<16x128xf32>
    %53 = arith.divf %48, %52 : vector<16x128xf32>
    %cst_19 = arith.constant -0.055555556 : f32
    %54 = vector.broadcast %cst_19 : f32 to vector<16x128xf32>
    %55 = arith.mulf %27, %54 : vector<16x128xf32>
    %56 = math.exp %55 : vector<16x128xf32>
    %cst_20 = arith.constant 4.000000e+00 : f32
    %57 = vector.broadcast %cst_20 : f32 to vector<16x128xf32>
    %58 = arith.mulf %57, %56 : vector<16x128xf32>
    %cst_21 = arith.constant -5.000000e-02 : f32
    %59 = vector.broadcast %cst_21 : f32 to vector<16x128xf32>
    %60 = arith.mulf %27, %59 : vector<16x128xf32>
    %61 = math.exp %60 : vector<16x128xf32>
    %cst_22 = arith.constant 7.000000e-02 : f32
    %62 = vector.broadcast %cst_22 : f32 to vector<16x128xf32>
    %63 = arith.mulf %62, %61 : vector<16x128xf32>
    %cst_23 = arith.constant 0.0497870669 : f32
    %64 = vector.broadcast %cst_23 : f32 to vector<16x128xf32>
    %65 = arith.mulf %30, %64 : vector<16x128xf32>
    %cst_24 = arith.constant 1.000000e+00 : f32
    %66 = vector.broadcast %cst_24 : f32 to vector<16x128xf32>
    %67 = arith.addf %66, %65 : vector<16x128xf32>
    %cst_25 = arith.constant 1.000000e+00 : f32
    %68 = vector.broadcast %cst_25 : f32 to vector<16x128xf32>
    %69 = arith.divf %68, %67 : vector<16x128xf32>
    %cst_26 = arith.constant 1.000000e+00 : f32
    %70 = vector.broadcast %cst_26 : f32 to vector<16x128xf32>
    %71 = arith.subf %70, %1 : vector<16x128xf32>
    %72 = arith.mulf %39, %71 : vector<16x128xf32>
    %73 = arith.mulf %44, %1 : vector<16x128xf32>
    %74 = arith.subf %72, %73 : vector<16x128xf32>
    %cst_27 = arith.constant 0.00999999977 : f32
    %75 = vector.broadcast %cst_27 : f32 to vector<16x128xf32>
    %76 = arith.mulf %75, %74 : vector<16x128xf32>
    %77 = arith.addf %1, %76 : vector<16x128xf32>
    %cst_28 = arith.constant 1.000000e+00 : f32
    %78 = vector.broadcast %cst_28 : f32 to vector<16x128xf32>
    %79 = arith.subf %78, %1 : vector<16x128xf32>
    %80 = arith.mulf %53, %79 : vector<16x128xf32>
    %81 = arith.mulf %58, %1 : vector<16x128xf32>
    %82 = arith.subf %80, %81 : vector<16x128xf32>
    %cst_29 = arith.constant 0.00999999977 : f32
    %83 = vector.broadcast %cst_29 : f32 to vector<16x128xf32>
    %84 = arith.mulf %83, %82 : vector<16x128xf32>
    %85 = arith.addf %1, %84 : vector<16x128xf32>
    %cst_30 = arith.constant 1.000000e+00 : f32
    %86 = vector.broadcast %cst_30 : f32 to vector<16x128xf32>
    %87 = arith.subf %86, %1 : vector<16x128xf32>
    %88 = arith.mulf %63, %87 : vector<16x128xf32>
    %89 = arith.mulf %69, %1 : vector<16x128xf32>
    %90 = arith.subf %88, %89 : vector<16x128xf32>
    %cst_31 = arith.constant 0.00999999977 : f32
    %91 = vector.broadcast %cst_31 : f32 to vector<16x128xf32>
    %92 = arith.mulf %91, %90 : vector<16x128xf32>
    %93 = arith.addf %1, %92 : vector<16x128xf32>
    %cst_32 = arith.constant 5.000000e+01 : f32
    %94 = vector.broadcast %cst_32 : f32 to vector<16x128xf32>
    %95 = arith.subf %27, %94 : vector<16x128xf32>
    %cst_33 = arith.constant 0.000000e+00 : f32
    %96 = vector.broadcast %cst_33 : f32 to vector<16x128xf32>
    %97 = arith.cmpf ogt, %95, %96 : vector<16x128xf32>
    %98 = arith.extui %97 : vector<16x128xi1> to vector<16x128xi32>
    %99 = arith.sitofp %98 : vector<16x128xi32> to vector<16x128xf32>
    %cst_34 = arith.constant 1.000000e+00 : f32
    %100 = vector.broadcast %cst_34 : f32 to vector<16x128xf32>
    %101 = arith.subf %100, %99 : vector<16x128xf32>
    %102 = arith.mulf %27, %101 : vector<16x128xf32>
    %c0_35 = arith.constant 0 : index
    %c0_36 = arith.constant 0 : index
    %103 = vector.load %arg2[%c0_35, %c0_36] : memref<16x128xf32, #tpu.memory_space<vmem>>, vector<16x128xf32>
    tpu.vector_store %arg2[%c0_35, %c0_36], %99 {strides = array<i32>} : memref<16x128xf32, #tpu.memory_space<vmem>>, vector<16x128xf32>,
    %c0_37 = arith.constant 0 : index
    %c0_38 = arith.constant 0 : index
    %104 = vector.load %arg3[%c0_37, %c0_38] : memref<16x128xf32, #tpu.memory_space<vmem>>, vector<16x128xf32>
    tpu.vector_store %arg3[%c0_37, %c0_38], %102 {strides = array<i32>} : memref<16x128xf32, #tpu.memory_space<vmem>>, vector<16x128xf32>,
    %c0_39 = arith.constant 0 : index
    %c0_40 = arith.constant 0 : index
    %105 = vector.load %arg4[%c0_39, %c0_40] : memref<16x128xf32, #tpu.memory_space<vmem>>, vector<16x128xf32>
    tpu.vector_store %arg4[%c0_39, %c0_40], %85 {strides = array<i32>} : memref<16x128xf32, #tpu.memory_space<vmem>>, vector<16x128xf32>,
    %c0_41 = arith.constant 0 : index
    %c0_42 = arith.constant 0 : index
    %106 = vector.load %arg5[%c0_41, %c0_42] : memref<16x128xf32, #tpu.memory_space<vmem>>, vector<16x128xf32>
    tpu.vector_store %arg5[%c0_41, %c0_42], %77 {strides = array<i32>} : memref<16x128xf32, #tpu.memory_space<vmem>>, vector<16x128xf32>,
    %c0_43 = arith.constant 0 : index
    %c0_44 = arith.constant 0 : index
    %107 = vector.load %arg6[%c0_43, %c0_44] : memref<16x128xf32, #tpu.memory_space<vmem>>, vector<16x128xf32>
    tpu.vector_store %arg6[%c0_43, %c0_44], %93 {strides = array<i32>} : memref<16x128xf32, #tpu.memory_space<vmem>>, vector<16x128xf32>,
    return
  }
  func.func @transform_0(%arg0: i32) -> (i32, i32) {
    %c0_i32 = arith.constant 0 : i32
    %c0_i32_0 = arith.constant 0 : i32
    return %arg0, %c0_i32 : i32, i32
  }
  func.func @transform_1(%arg0: i32) -> (i32, i32) {
    %c0_i32 = arith.constant 0 : i32
    %c0_i32_0 = arith.constant 0 : i32
    return %arg0, %c0_i32 : i32, i32
  }
  func.func @transform_2(%arg0: i32) -> (i32, i32) {
    %c0_i32 = arith.constant 0 : i32
    %c0_i32_0 = arith.constant 0 : i32
    return %arg0, %c0_i32 : i32, i32
  }
  func.func @transform_3(%arg0: i32) -> (i32, i32) {
    %c0_i32 = arith.constant 0 : i32
    %c0_i32_0 = arith.constant 0 : i32
    return %arg0, %c0_i32 : i32, i32
  }
  func.func @transform_4(%arg0: i32) -> (i32, i32) {
    %c0_i32 = arith.constant 0 : i32
    %c0_i32_0 = arith.constant 0 : i32
    return %arg0, %c0_i32 : i32, i32
  }
  func.func @transform_5(%arg0: i32) -> (i32, i32) {
    %c0_i32 = arith.constant 0 : i32
    %c0_i32_0 = arith.constant 0 : i32
    return %arg0, %c0_i32 : i32, i32
  }
}

</mosaic_0001>

<bundles_post_ra>
// kernel: _simhh_step_init.1
= control target key start
LH: loop header
LB: loop body
LE: loop exit
PB: predicated region body
PF: predicated region fallthrough
CT: control target
= control target key end

     0   :  { %v264_v12 = vmov 0.0   ;;  %s457_s0 = inlined_call_operand.vmem [shape: f32[16,128], index: 0, kind: input, shape index: {}]   ;;  %s458_s1 = inlined_call_operand.vmem [shape: f32[16,128], index: 1, kind: output, shape index: {0}]   ;;  %s459_s2 = inlined_call_operand.vmem [shape: f32[16,128], index: 2, kind: output, shape index: {1}]   ;;  %s460_s3 = inlined_call_operand.vmem [shape: f32[16,128], index: 3, kind: output, shape index: {2}]   ;;  %s461_s4 = inlined_call_operand.vmem [shape: f32[16,128], index: 4, kind: output, shape index: {3}]   ;;  %s462_s5 = inlined_call_operand.vmem [shape: f32[16,128], index: 5, kind: output, shape index: {4}]  }
   0x1   :  { %v13_v0 = vld [vmem:[%s457_s0] sm:$0xff]  ;;  %v14_v1 = vld [vmem:[%s457_s0 + $0x8] sm:$0xff] }
   0x2   :  { %v229_v2 = vadd.f32 3.1800003, %v13_v0  ;;  %v230_v3 = vadd.f32 3.1800003, %v14_v1 }
   0x4   :  { %v19_v4 = vmul.f32 0.5, %v229_v2  ;;  %v20_v5 = vmul.f32 0.5, %v230_v3 }
   0x6   :  { %v231_v6 = vadd.f32 -50.0, %v19_v4  ;;  %v232_v7 = vadd.f32 -50.0, %v20_v5  ;;  %v23_v8 = vmul.f32 -0.1, %v19_v4  ;;  %v113_v9 = vmul.f32 -0.055555556, %v19_v4 }
   0x7   :  { %v24_v10 = vmul.f32 -0.1, %v20_v5  ;;  %v114_v19 = vmul.f32 -0.055555556, %v20_v5  ;;  %v67_v22 = vmul.f32 -0.0125, %v19_v4 }
   0x8   :  { %vm189_vm0 = vcmp.gt.f32.partialorder %v231_v6, 0.0  ;;  %vm190_vm1 = vcmp.gt.f32.partialorder %v232_v7, 0.0  ;;  %v25_v11 = vmul.f32 1.442695, %v23_v8  ;;  %v115_v15 = vmul.f32 1.442695, %v113_v9 }
   0x9   :  { %v233_v13 = vsel %vm189_vm0, 1.0, %v264_v12  ;;  %v234_v14 = vsel %vm190_vm1, 1.0, %v264_v12  ;;  %v27_v16 = vmul.f32 1.442695, %v24_v10  ;;  %v117_v23 = vmul.f32 1.442695, %v114_v19 }
   0xa   :  { %v195_v17 = vsub.f32 1.0, %v233_v13  ;;  %199 = vst [vmem:[%s458_s1] sm:$0xff] %v233_v13  ;;  %v196_v18 = vsub.f32 1.0, %v234_v14  ;;  %236 = vpow2.f32 %v25_v11  ;;  %v68_v24 = vmul.f32 -0.0125, %v20_v5 }
   0xb   :  { %200 = vst [vmem:[%s458_s1 + $0x8] sm:$0xff] %v234_v14  ;;  %238 = vpow2.f32 %v115_v15  ;;  %v69_v25 = vmul.f32 1.442695, %v67_v22  ;;  %v121_v26 = vmul.f32 -0.05, %v19_v4  ;;  %v75_v30 = vadd.f32 25.0, %v19_v4 }
   0xc   :  { %v197_v20 = vmul.f32 %v195_v17, %v19_v4  ;;  %v198_v21 = vmul.f32 %v196_v18, %v20_v5  ;;  %240 = vpow2.f32 %v27_v16  ;;  %v122_v27 = vmul.f32 -0.05, %v20_v5 }
   0xd   :  { %242 = vpow2.f32 %v117_v23  ;;  %v71_v28 = vmul.f32 1.442695, %v68_v24  ;;  %v76_v31 = vadd.f32 25.0, %v20_v5  ;;  %v123_v32 = vmul.f32 1.442695, %v121_v26 }
   0xe   :  { %201 = vst [vmem:[%s459_s2] sm:$0xff] %v197_v20  ;;  %v29_v35 = vadd.f32 10.0, %v19_v4  ;;  %244 = vpow2.f32 %v69_v25  ;;  %v30_v38 = vadd.f32 10.0, %v20_v5  ;;  %v125_v39 = vmul.f32 1.442695, %v122_v27 }
   0xf   :  { %202 = vst [vmem:[%s459_s2 + $0x8] sm:$0xff] %v198_v21  ;;  %246 = vpow2.f32 %v71_v28  ;;  %v317_v46 = vmul.f32 0.1, %v75_v30  ;;  %v320_v47 = vmul.f32 0.1, %v76_v31 }
  0x10   :  { %v237_v29 = vpop.eup %236  ;;  %248 = vpow2.f32 %v123_v32  ;;  %v322_v48 = vmul.f32 0.01, %v29_v35  ;;  %v327_v50 = vmul.f32 0.01, %v30_v38 }
  0x11   :  { %v239_v33 = vpop.eup %238  ;;  %v79_v34 = vmul.f32 0.082085, %v237_v29  ;;  %v33_v36 = vmul.f32 0.36787945, %v237_v29  ;;  %v129_v43 = vmul.f32 0.049787067, %v237_v29 }
  0x12   :  { %v241_v37 = vpop.eup %240  ;;  %v119_v44 = vmul.f32 4.0, %v239_v33 }
  0x13   :  { %v313_v40 = vsub.f32 1.0, %v79_v34  ;;  %v80_v41 = vmul.f32 0.082085, %v241_v37  ;;  %v315_v42 = vsub.f32 1.0, %v33_v36  ;;  %v243_v45 = vpop.eup %242  ;;  %v34_v51 = vmul.f32 0.36787945, %v241_v37 }
  0x14   :  { %v245_v52 = vpop.eup %244  ;;  %v331_v55 = vadd.f32 1.0, %v129_v43  ;;  %v333_v57 = vmul.f32 0.0, %v119_v44  ;;  %v120_v58 = vmul.f32 4.0, %v243_v45  ;;  %v130_v63 = vmul.f32 0.049787067, %v241_v37 }
  0x15   :  { %250 = vrcp.f32 %v313_v40  ;;  %v324_v49 = vsub.f32 1.0, %v80_v41  ;;  %v92_v53 = vand.u32 2147483647, %v313_v40  ;;  %v94_v54 = vand.u32 2147483648, %v313_v40  ;;  %v247_v56 = vpop.eup %246 }
  0x16   :  { %252 = vrcp.f32 %v315_v42  ;;  %v46_v59 = vand.u32 2147483647, %v315_v42  ;;  %v48_v62 = vand.u32 2147483648, %v315_v42  ;;  %v340_v0 = vpop.eup %248  ;;  %vm88_vm2 = vweird.f32 %v313_v40 }
  0x17   :  { %254 = vpow2.f32 %v125_v39  ;;  %v107_v60 = vand.u32 2147483647, %v324_v49  ;;  %v109_v61 = vand.u32 2147483648, %v324_v49  ;;  %vm42_vm3 = vweird.f32 %v315_v42 }
  0x18   :  { %256 = vrcp.f32 %v324_v49  ;;  %v73_v1 = vmul.f32 0.125, %v245_v52  ;;  %v344_v2 = vsub.f32 1.0, %v34_v51  ;;  %vm346_vm4 = vcmp.eq.f32.partialorder %v92_v53, 8.507059e+37 }
  0x19   :  { %v95_v5 = vor.u32 1.1754944e-38, %v94_v54  ;;  %vm103_vm5 = vweird.f32 %v324_v49  ;;  %258 = vrcp.f32 %v331_v55  ;;  %v353_v8 = vmul.f32 0.0, %v120_v58 }
  0x1a   :  { %vm355_vm6 = vcmp.eq.f32.partialorder %v46_v59, 8.507059e+37  ;;  %260 = vrcp.f32 %v344_v2  ;;  %vm362_vm7 = vcmp.eq.f32.partialorder %v107_v60, 8.507059e+37  ;;  %v110_v12 = vor.u32 1.1754944e-38, %v109_v61 }
  0x1b   :  { %v251_v3 = vpop.eup %250  ;;  %v49_v14 = vor.u32 1.1754944e-38, %v48_v62  ;;  %v163_v17 = vmul.f32 0.0, %v73_v1  ;;  %v74_v18 = vmul.f32 0.125, %v247_v56  ;;  %vm138_vm10 = vweird.f32 %v331_v55 }
  0x1c   :  { %v253_v6 = vpop.eup %252  ;;  %v84_v7 = vmul.f32 %v251_v3, %v313_v40  ;;  %vm89_vm8 = vweird.f32 %v251_v3  ;;  %vm57_vm11 = vweird.f32 %v344_v2  ;;  %v61_v22 = vand.u32 2147483647, %v344_v2 }
  0x1d   :  { %v360_v10 = vpop.eup %254  ;;  %v38_v13 = vmul.f32 %v253_v6, %v315_v42  ;;  %vm43_vm9 = vweird.f32 %v253_v6  ;;  %v63_v23 = vand.u32 2147483648, %v344_v2  ;;  %vm374_vm12 = vmor %vm88_vm2, %vm89_vm8  ;;  %v378_v28 = vadd.f32 1.0, %v130_v63 }
  0x1e   :  { %v257_v15 = vpop.eup %256  ;;  %v85_v16 = vsub.f32 1.0, %v84_v7  ;;  %vm382_vm14 = vmor %vm42_vm3, %vm43_vm9  ;;  %v142_v33 = vand.u32 2147483647, %v331_v55  ;;  %v144_v34 = vand.u32 2147483648, %v331_v55  ;;  %v127_v4 = vmul.f32 0.07, %v340_v0 }
  0x1f   :  { %v99_v19 = vmul.f32 %v257_v15, %v324_v49  ;;  %v39_v20 = vsub.f32 1.0, %v38_v13  ;;  %v259_v24 = vpop.eup %258  ;;  %vm104_vm13 = vweird.f32 %v257_v15  ;;  %262 = vrcp.f32 %v378_v28 }
  0x20   :  { %v86_v21 = vmul.f32 %v251_v3, %v85_v16  ;;  %v261_v29 = vpop.eup %260  ;;  %v134_v32 = vmul.f32 %v259_v24, %v331_v55  ;;  %vm139_vm15 = vweird.f32 %v259_v24  ;;  %vm394_vm0 = vmor %vm103_vm5, %vm104_vm13  ;;  %v64_v51 = vor.u32 1.1754944e-38, %v63_v23 }
  0x21   :  { %v100_v26 = vsub.f32 1.0, %v99_v19  ;;  %v40_v27 = vmul.f32 %v253_v6, %v39_v20  ;;  %v53_v37 = vmul.f32 %v261_v29, %v344_v2  ;;  %vm58_vm1 = vweird.f32 %v261_v29  ;;  %vm412_vm2 = vmor %vm138_vm10, %vm139_vm15 }
  0x22   :  { %v87_v30 = vadd.f32 %v251_v3, %v86_v21  ;;  %v135_v40 = vsub.f32 1.0, %v134_v32  ;;  %v145_v59 = vor.u32 1.1754944e-38, %v144_v34  ;;  %vm422_vm3 = vmor %vm57_vm11, %vm58_vm1  ;;  %vm62_vm5 = vcmp.eq.f32.partialorder %v61_v22, 8.507059e+37 }
  0x23   :  { %v101_v35 = vmul.f32 %v257_v15, %v100_v26  ;;  %v41_v36 = vadd.f32 %v253_v6, %v40_v27  ;;  %v54_v44 = vsub.f32 1.0, %v53_v37  ;;  %v157_v16 = vand.u32 2147483647, %v378_v28 }
  0x24   :  { %v91_v38 = vsel %vm374_vm12, %v251_v3, %v87_v30  ;;  %v136_v52 = vmul.f32 %v259_v24, %v135_v40  ;;  %v128_v22 = vmul.f32 0.07, %v360_v10 }
  0x25   :  { %v96_v41 = vsel %vm346_vm4, %v95_v5, %v91_v38  ;;  %v102_v42 = vadd.f32 %v257_v15, %v101_v35  ;;  %v45_v43 = vsel %vm382_vm14, %v253_v6, %v41_v36  ;;  %v55_v56 = vmul.f32 %v261_v29, %v54_v44  ;;  %v263_v1 = vpop.eup %262 }
  0x26   :  { %v97_v45 = vmul.f32 %v96_v41, %v317_v46  ;;  %v50_v49 = vsel %vm355_vm6, %v49_v14, %v45_v43  ;;  %vm143_vm4 = vcmp.eq.f32.partialorder %v142_v33, 8.507059e+37  ;;  %vm153_vm6 = vweird.f32 %v378_v28 }
  0x27   :  { %v106_v53 = vsel %vm394_vm0, %v257_v15, %v102_v42  ;;  %v51_v54 = vmul.f32 %v50_v49, %v322_v48  ;;  %v137_v48 = vadd.f32 %v259_v24, %v136_v52  ;;  %v56_v63 = vadd.f32 %v261_v29, %v55_v56 }
  0x28   :  { %v173_v46 = vsub.f32 %v97_v45, %v333_v57  ;;  %v111_v60 = vsel %vm362_vm7, %v110_v12, %v106_v53  ;;  %v164_v57 = vmul.f32 0.0, %v74_v18  ;;  %v149_v12 = vmul.f32 %v263_v1, %v378_v28 }
  0x29   :  { %v112_v55 = vmul.f32 %v111_v60, %v320_v47  ;;  %v165_v62 = vsub.f32 %v51_v54, %v163_v17  ;;  %v141_v5 = vsel %vm412_vm2, %v259_v24, %v137_v48  ;;  %v60_v7 = vsel %vm422_vm3, %v261_v29, %v56_v63 }
  0x2a   :  { %v175_v3 = vmul.f32 0.01, %v173_v46  ;;  %v146_v9 = vsel %vm143_vm4, %v145_v59, %v141_v5  ;;  %v65_v47 = vsel %vm62_vm5, %v64_v51, %v60_v7  ;;  %v150_v15 = vsub.f32 1.0, %v149_v12 }
  0x2b   :  { %v174_v2 = vsub.f32 %v112_v55, %v353_v8  ;;  %v167_v6 = vmul.f32 0.01, %v165_v62  ;;  %v179_v11 = vmul.f32 0.0, %v146_v9  ;;  %v66_v0 = vmul.f32 %v65_v47, %v327_v50 }
  0x2c   :  { %203 = vst [vmem:[%s460_s3] sm:$0xff] %v175_v3  ;;  %v159_v8 = vand.u32 2147483648, %v378_v28  ;;  %vm154_vm7 = vweird.f32 %v263_v1  ;;  %v151_v19 = vmul.f32 %v263_v1, %v150_v15  ;;  %vm158_vm9 = vcmp.eq.f32.partialorder %v157_v16, 8.507059e+37 }
  0x2d   :  { %v176_v13 = vmul.f32 0.01, %v174_v2  ;;  %205 = vst [vmem:[%s461_s4] sm:$0xff] %v167_v6  ;;  %v181_v14 = vsub.f32 %v127_v4, %v179_v11  ;;  %v166_v17 = vsub.f32 %v66_v0, %v164_v57  ;;  %vm155_vm8 = vmor %vm153_vm6, %vm154_vm7 }
  0x2e   :  { %v160_v21 = vor.u32 1.1754944e-38, %v159_v8  ;;  %v152_v50 = vadd.f32 %v263_v1, %v151_v19 }
  0x2f   :  { %204 = vst [vmem:[%s460_s3 + $0x8] sm:$0xff] %v176_v13  ;;  %v183_v18 = vmul.f32 0.01, %v181_v14  ;;  %v168_v20 = vmul.f32 0.01, %v166_v17 }
  0x30   :  { %v156_v23 = vsel %vm155_vm8, %v263_v1, %v152_v50 }
  0x31   :  { %207 = vst [vmem:[%s462_s5] sm:$0xff] %v183_v18  ;;  %v161_v24 = vsel %vm158_vm9, %v160_v21, %v156_v23 }
  0x32   :  { %206 = vst [vmem:[%s461_s4 + $0x8] sm:$0xff] %v168_v20  ;;  %v180_v25 = vmul.f32 0.0, %v161_v24 }
  0x34   :  { %v182_v26 = vsub.f32 %v128_v22, %v180_v25 }
  0x36   :  { %v184_v27 = vmul.f32 0.01, %v182_v26 }
  0x38   :  { %208 = vst [vmem:[%s462_s5 + $0x8] sm:$0xff] %v184_v27 }

</bundles_post_ra>
